<compile_context>
chip_gen: v7x
topology: tpu7x:2x2x1
jax: 0.10.0
libtpu: 0.0.40
codegen_flags: <defaults>
</compile_context>

<pallas_src>
import jax
import jax.numpy as jnp
import numpy as np
from jax.experimental import pallas as pl
from jax.experimental.pallas import tpu as pltpu

KSIZE = 9
PAD = 4
EPS = 1e-5
_LANE = 128
_SUB = 128            # in-kernel sub-chunk of L rows (keeps the 9-tap accumulator in vregs)


def _round_up(x, m):
    return (x + m - 1) // m * m


def convblock_kernel(x_ref, w1_ref, b1_ref, w2_ref, b2_ref, o_ref):
    """One (batch, L-tile) grid step.

    x_ref : (1, 1, LT+16, Cp) bf16 haloed input window (rows [PAD, PAD+LT) are the tile)
    w1_ref: (9*Cp, Hp)        bf16 conv1 weight slab, tap-major, BN1 scale folded in
    b1_ref: (1, Hp)           f32  folded BN1 shift
    w2_ref: (Hp, Cp)          bf16 1x1-conv weight, BN2 scale folded in
    b2_ref: (1, Cp)           f32  folded BN2 shift
    o_ref : (1, Cp, LT)       f32  output tile, already in NCL layout
    """
    Cp = x_ref.shape[3]
    LT = o_ref.shape[2]
    b1 = b1_ref[...]
    b2 = b2_ref[...]

    sub = min(_SUB, LT)
    for s0 in range(0, LT, sub):
        sl = min(sub, LT - s0)
        # Conv1d(k=9, pad=4): 9 shifted bf16 MXU matmuls, f32 value accumulation (no
        # VMEM scratch round trips).
        acc = jnp.dot(x_ref[0, 0, pl.ds(s0, sl), :],
                      w1_ref[pl.ds(0, Cp), :],
                      preferred_element_type=jnp.float32)
        for k in range(1, KSIZE):
            acc = acc + jnp.dot(x_ref[0, 0, pl.ds(s0 + k, sl), :],
                                w1_ref[pl.ds(k * Cp, Cp), :],
                                preferred_element_type=jnp.float32)

        # BN1 shift (scale already folded into w1) + SiLU, in f32.
        h = acc + b1
        h = h * jax.nn.sigmoid(h)

        # 1x1 conv (bf16 MXU) + BN2 shift + residual add, then store as NCL (XLU transpose).
        y = jnp.dot(h.astype(jnp.bfloat16), w2_ref[...],
                    preferred_element_type=jnp.float32) + b2
        res = x_ref[0, 0, pl.ds(s0 + PAD, sl), :].astype(jnp.float32)
        o_ref[0, :, pl.ds(s0, sl)] = jnp.transpose(y + res)


def _choose_l_tile(L, c_p, h_p, budget_bytes=12 * 1024 * 1024, lt_cap=1024):
    """Pick (LT, nL) balancing raggedness, with the weight slabs counted in the budget."""
    fixed = 2 * (KSIZE * c_p * h_p + h_p * c_p) * 2 + 8 * (h_p + c_p)   # dbl-buffered weights
    per_row = 2 * (2 * c_p) + 2 * (4 * c_p)        # dbl-buffered bf16 window row + f32 out row
    lt_max = (max(budget_bytes - fixed, 128 * per_row) // per_row) // _LANE * _LANE
    lt_max = max(_LANE, min(lt_cap, lt_max))
    if L <= lt_max:
        return _round_up(max(L, 8), 16), 1
    n_l = -(-L // lt_max)
    return _round_up(-(-L // n_l), _LANE), n_l


def conv_block_pallas(x_ncl, w1, gamma1, beta1, mean1, var1,
                      w2, gamma2, beta2, mean2, var2, l_tile=None):
    """x_ncl: (B, Cin, L) float32, PyTorch NCL layout.  Returns (B, Cin, L) float32."""
    B, Cin, L = x_ncl.shape
    H = w1.shape[0]
    Cout = w2.shape[0]
    assert Cout == Cin, "residual add requires oup == inp"

    Cp = _round_up(Cin, _LANE)
    Hp = _round_up(H, _LANE)
    if l_tile is None:
        LT, nL = _choose_l_tile(L, Cp, Hp)
    else:
        LT = l_tile
        nL = -(-L // LT)
        assert LT % 16 == 0 and (nL == 1 or LT % _LANE == 0), \
            "l_tile must be a multiple of 16 (and of 128 when tiling L)"
    Lp = nL * LT
    LTW = LT + 4 * PAD      # 4 halo + LT + 4 halo + 8 rows of bf16 sublane-tile alignment slack

    # ---- input glue: NCL -> channels-last, channel/L padded, bf16, per-tile haloed windows ----
    x_nlc = jnp.transpose(x_ncl, (0, 2, 1))                                   # (B, L, Cin)
    x_pad = jnp.pad(x_nlc, ((0, 0), (PAD, Lp + 3 * PAD - L), (0, Cp - Cin))
                    ).astype(jnp.bfloat16)                                    # (B, Lp+16, Cp)
    if nL == 1:
        x_win = x_pad[:, None, :, :]                                          # (B, 1, LT+16, Cp)
    else:
        idx = jnp.arange(nL)[:, None] * LT + jnp.arange(LTW)[None, :]
        x_win = jnp.take(x_pad, idx, axis=1)                                  # (B, nL, LT+16, Cp)

    # ---- weights: fold BN scales in f32, then bf16 lane-dense slabs ----
    inv1 = (gamma1 / jnp.sqrt(var1 + EPS)).astype(jnp.float32)                # (H,)
    inv2 = (gamma2 / jnp.sqrt(var2 + EPS)).astype(jnp.float32)                # (Cout,)
    w1_f = w1.astype(jnp.float32) * inv1[:, None, None]                       # (H, Cin, 9)
    w2_f = w2[:, :, 0].astype(jnp.float32) * inv2[:, None]                    # (Cout, H)

    w1_t = jnp.transpose(w1_f, (2, 1, 0))                                     # (9, Cin, H)
    w1_2d = jnp.pad(w1_t, ((0, 0), (0, Cp - Cin), (0, Hp - H))
                    ).reshape(KSIZE * Cp, Hp).astype(jnp.bfloat16)            # (9*Cp, Hp)
    w2_2d = jnp.pad(jnp.transpose(w2_f), ((0, Hp - H), (0, Cp - Cout))
                    ).astype(jnp.bfloat16)                                    # (Hp, Cp)

    b1 = jnp.pad(beta1 - mean1 * inv1, (0, Hp - H)).reshape(1, Hp).astype(jnp.float32)
    b2 = jnp.pad(beta2 - mean2 * inv2, (0, Cp - Cout)).reshape(1, Cp).astype(jnp.float32)

    # VMEM need: double-buffered input window + output tile + weight slabs + biases.
    vmem_need = (2 * LTW * Cp * 2 + 2 * Cp * LT * 4
                 + 2 * (KSIZE * Cp * Hp + Hp * Cp) * 2 + 8 * (Hp + Cp))
    vmem_limit = int(min(max(2 * vmem_need, 32 * 1024 * 1024), 48 * 1024 * 1024))

    out = pl.pallas_call(
        convblock_kernel,
        out_shape=jax.ShapeDtypeStruct((B, Cp, Lp), jnp.float32),
        grid_spec=pltpu.PrefetchScalarGridSpec(
            num_scalar_prefetch=0,
            grid=(B, nL),
            in_specs=[
                pl.BlockSpec((1, 1, LTW, Cp), lambda b, j: (b, j, 0, 0)),     # haloed window
                pl.BlockSpec((KSIZE * Cp, Hp), lambda b, j: (0, 0)),          # w1 slab
                pl.BlockSpec((1, Hp), lambda b, j: (0, 0)),                   # b1
                pl.BlockSpec((Hp, Cp), lambda b, j: (0, 0)),                  # w2 slab
                pl.BlockSpec((1, Cp), lambda b, j: (0, 0)),                   # b2
            ],
            out_specs=pl.BlockSpec((1, Cp, LT), lambda b, j: (b, 0, j)),      # NCL output blocks
        ),
        compiler_params=pltpu.CompilerParams(
            dimension_semantics=("parallel", "parallel"),
            vmem_limit_bytes=vmem_limit),
    )(x_win, w1_2d, b1, w2_2d, b2)

    return out[:, :Cin, :L]                                                   # drop channel/L pad


conv_block = jax.jit(conv_block_pallas, static_argnames=("l_tile",))


def conv_block_reference(x_ncl, w1, gamma1, beta1, mean1, var1,
                         w2, gamma2, beta2, mean2, var2):
    """Pure-JAX f32 reference mirroring the PyTorch module (inference-mode BN)."""
    def bn(y, g, b, m, v):
        return (y - m[None, :, None]) / jnp.sqrt(v[None, :, None] + EPS) \
               * g[None, :, None] + b[None, :, None]

    y = jax.lax.conv_general_dilated(
        x_ncl, w1, window_strides=(1,), padding=[(PAD, PAD)],
        dimension_numbers=("NCH", "OIH", "NCH"))
    y = bn(y, gamma1, beta1, mean1, var1)
    y = y * jax.nn.sigmoid(y)
    y = jax.lax.conv_general_dilated(
        y, w2, window_strides=(1,), padding=[(0, 0)],
        dimension_numbers=("NCH", "OIH", "NCH"))
    y = bn(y, gamma2, beta2, mean2, var2)
    return x_ncl + y


if __name__ == "__main__":
    key = jax.random.PRNGKey(0)
    keys = jax.random.split(key, 12)

    # Shapes consistent with the module: batch=2, inp=oup=4, expand_ratio=2 -> hidden=8.
    B, Cin, L = 2, 4, 16
    H, Cout = round(Cin * 2), Cin

    w1 = jax.random.normal(keys[1], (H, Cin, KSIZE), jnp.float32) * 0.1       # Conv1d(inp, H, 9)
    w2 = jax.random.normal(keys[2], (Cout, H, 1), jnp.float32) * 0.1          # Conv1d(H, oup, 1)
    gamma1 = 1.0 + 0.1 * jax.random.normal(keys[3], (H,), jnp.float32)
    beta1 = 0.1 * jax.random.normal(keys[4], (H,), jnp.float32)
    mean1 = 0.1 * jax.random.normal(keys[5], (H,), jnp.float32)
    var1 = 1.0 + 0.1 * jax.random.uniform(keys[6], (H,), jnp.float32)
    gamma2 = 1.0 + 0.1 * jax.random.normal(keys[7], (Cout,), jnp.float32)
    beta2 = 0.1 * jax.random.normal(keys[8], (Cout,), jnp.float32)
    mean2 = 0.1 * jax.random.normal(keys[9], (Cout,), jnp.float32)
    var2 = 1.0 + 0.1 * jax.random.uniform(keys[10], (Cout,), jnp.float32)
    params = (w1, gamma1, beta1, mean1, var1, w2, gamma2, beta2, mean2, var2)

    # Test 1: single L tile (L=16).
    x = jax.random.normal(keys[0], (B, Cin, L), jnp.float32)
    out = jax.block_until_ready(conv_block(x, *params))
    ref = jax.block_until_ready(conv_block_reference(x, *params))
    np.testing.assert_allclose(np.asarray(out), np.asarray(ref), rtol=2e-2, atol=2e-2)

    # Test 2: exercises L tiling + halo handling + ragged last tile (L=300, tile=128 -> 3 tiles).
    L2 = 300
    x2 = jax.random.normal(keys[11], (B, Cin, L2), jnp.float32)
    out2 = jax.block_until_ready(conv_block(x2, *params, l_tile=128))
    ref2 = jax.block_until_ready(conv_block_reference(x2, *params))
    np.testing.assert_allclose(np.asarray(out2), np.asarray(ref2), rtol=2e-2, atol=2e-2)

    print("KERNEL_OK")
</pallas_src>

<mosaic_0001>
module attributes {stable_mosaic.version = 11 : i64} {
  func.func @convblock_kernel(%arg0: i32, %arg1: i32, %arg2: memref<1x1x32x128xbf16, #tpu.memory_space<vmem>>, %arg3: memref<1152x128xbf16, #tpu.memory_space<vmem>>, %arg4: memref<1x128xf32, #tpu.memory_space<vmem>>, %arg5: memref<128x128xbf16, #tpu.memory_space<vmem>>, %arg6: memref<1x128xf32, #tpu.memory_space<vmem>>, %arg7: memref<1x128x16xf32, #tpu.memory_space<vmem>>) attributes {dimension_semantics = [#tpu.dimension_semantics<parallel>, #tpu.dimension_semantics<parallel>], iteration_bounds = array<i64: 2, 1>, scalar_prefetch = 0 : i64, scratch_operands = 0 : i64, tpu.core_type = #tpu.core_type<tc>, window_params = [{transform_indices = @transform_0, window_bounds = array<i64: 1, 1, 32, 128>}, {pipeline_mode = #tpu.pipeline_mode<synchronous>, transform_indices = @transform_1, window_bounds = array<i64: 1152, 128>}, {pipeline_mode = #tpu.pipeline_mode<synchronous>, transform_indices = @transform_2, window_bounds = array<i64: 1, 128>}, {pipeline_mode = #tpu.pipeline_mode<synchronous>, transform_indices = @transform_3, window_bounds = array<i64: 128, 128>}, {pipeline_mode = #tpu.pipeline_mode<synchronous>, transform_indices = @transform_4, window_bounds = array<i64: 1, 128>}, {transform_indices = @transform_5, window_bounds = array<i64: 1, 128, 16>}]} {
    %c0 = arith.constant 0 : index
    %c0_0 = arith.constant 0 : index
    %0 = vector.load %arg4[%c0, %c0_0] : memref<1x128xf32, #tpu.memory_space<vmem>>, vector<1x128xf32>
    %c0_1 = arith.constant 0 : index
    %c0_2 = arith.constant 0 : index
    %1 = vector.load %arg6[%c0_1, %c0_2] : memref<1x128xf32, #tpu.memory_space<vmem>>, vector<1x128xf32>
    %c0_3 = arith.constant 0 : index
    %c0_4 = arith.constant 0 : index
    %c0_5 = arith.constant 0 : index
    %c0_6 = arith.constant 0 : index
    %2 = vector.load %arg2[%c0_3, %c0_4, %c0_5, %c0_6] : memref<1x1x32x128xbf16, #tpu.memory_space<vmem>>, vector<1x1x16x128xbf16>
    %3 = vector.shape_cast %2 : vector<1x1x16x128xbf16> to vector<16x128xbf16>
    %c0_7 = arith.constant 0 : index
    %c0_8 = arith.constant 0 : index
    %4 = vector.load %arg3[%c0_7, %c0_8] : memref<1152x128xbf16, #tpu.memory_space<vmem>>, vector<128x128xbf16>
    %cst = arith.constant dense<0.000000e+00> : vector<16x128xf32>
    %5 = tpu.matmul %3, %4, %cst {dimension_numbers = #tpu.dot_dimension_numbers<[1], [0], [0], [1], [0, 0, 1, 1], [], []>} : vector<16x128xbf16>, vector<128x128xbf16>, vector<16x128xf32> -> vector<16x128xf32>
    %c0_9 = arith.constant 0 : index
    %c0_10 = arith.constant 0 : index
    %c1 = arith.constant 1 : index
    %c0_11 = arith.constant 0 : index
    %6 = vector.load %arg2[%c0_9, %c0_10, %c1, %c0_11] : memref<1x1x32x128xbf16, #tpu.memory_space<vmem>>, vector<1x1x16x128xbf16>
    %7 = vector.shape_cast %6 : vector<1x1x16x128xbf16> to vector<16x128xbf16>
    %c128 = arith.constant 128 : index
    %c0_12 = arith.constant 0 : index
    %8 = vector.load %arg3[%c128, %c0_12] : memref<1152x128xbf16, #tpu.memory_space<vmem>>, vector<128x128xbf16>
    %cst_13 = arith.constant dense<0.000000e+00> : vector<16x128xf32>
    %9 = tpu.matmul %7, %8, %cst_13 {dimension_numbers = #tpu.dot_dimension_numbers<[1], [0], [0], [1], [0, 0, 1, 1], [], []>} : vector<16x128xbf16>, vector<128x128xbf16>, vector<16x128xf32> -> vector<16x128xf32>
    %10 = arith.addf %5, %9 : vector<16x128xf32>
    %c0_14 = arith.constant 0 : index
    %c0_15 = arith.constant 0 : index
    %c2 = arith.constant 2 : index
    %c0_16 = arith.constant 0 : index
    %11 = vector.load %arg2[%c0_14, %c0_15, %c2, %c0_16] : memref<1x1x32x128xbf16, #tpu.memory_space<vmem>>, vector<1x1x16x128xbf16>
    %12 = vector.shape_cast %11 : vector<1x1x16x128xbf16> to vector<16x128xbf16>
    %c256 = arith.constant 256 : index
    %c0_17 = arith.constant 0 : index
    %13 = vector.load %arg3[%c256, %c0_17] : memref<1152x128xbf16, #tpu.memory_space<vmem>>, vector<128x128xbf16>
    %cst_18 = arith.constant dense<0.000000e+00> : vector<16x128xf32>
    %14 = tpu.matmul %12, %13, %cst_18 {dimension_numbers = #tpu.dot_dimension_numbers<[1], [0], [0], [1], [0, 0, 1, 1], [], []>} : vector<16x128xbf16>, vector<128x128xbf16>, vector<16x128xf32> -> vector<16x128xf32>
    %15 = arith.addf %10, %14 : vector<16x128xf32>
    %c0_19 = arith.constant 0 : index
    %c0_20 = arith.constant 0 : index
    %c3 = arith.constant 3 : index
    %c0_21 = arith.constant 0 : index
    %16 = vector.load %arg2[%c0_19, %c0_20, %c3, %c0_21] : memref<1x1x32x128xbf16, #tpu.memory_space<vmem>>, vector<1x1x16x128xbf16>
    %17 = vector.shape_cast %16 : vector<1x1x16x128xbf16> to vector<16x128xbf16>
    %c384 = arith.constant 384 : index
    %c0_22 = arith.constant 0 : index
    %18 = vector.load %arg3[%c384, %c0_22] : memref<1152x128xbf16, #tpu.memory_space<vmem>>, vector<128x128xbf16>
    %cst_23 = arith.constant dense<0.000000e+00> : vector<16x128xf32>
    %19 = tpu.matmul %17, %18, %cst_23 {dimension_numbers = #tpu.dot_dimension_numbers<[1], [0], [0], [1], [0, 0, 1, 1], [], []>} : vector<16x128xbf16>, vector<128x128xbf16>, vector<16x128xf32> -> vector<16x128xf32>
    %20 = arith.addf %15, %19 : vector<16x128xf32>
    %c0_24 = arith.constant 0 : index
    %c0_25 = arith.constant 0 : index
    %c4 = arith.constant 4 : index
    %c0_26 = arith.constant 0 : index
    %21 = vector.load %arg2[%c0_24, %c0_25, %c4, %c0_26] : memref<1x1x32x128xbf16, #tpu.memory_space<vmem>>, vector<1x1x16x128xbf16>
    %22 = vector.shape_cast %21 : vector<1x1x16x128xbf16> to vector<16x128xbf16>
    %c512 = arith.constant 512 : index
    %c0_27 = arith.constant 0 : index
    %23 = vector.load %arg3[%c512, %c0_27] : memref<1152x128xbf16, #tpu.memory_space<vmem>>, vector<128x128xbf16>
    %cst_28 = arith.constant dense<0.000000e+00> : vector<16x128xf32>
    %24 = tpu.matmul %22, %23, %cst_28 {dimension_numbers = #tpu.dot_dimension_numbers<[1], [0], [0], [1], [0, 0, 1, 1], [], []>} : vector<16x128xbf16>, vector<128x128xbf16>, vector<16x128xf32> -> vector<16x128xf32>
    %25 = arith.addf %20, %24 : vector<16x128xf32>
    %c0_29 = arith.constant 0 : index
    %c0_30 = arith.constant 0 : index
    %c5 = arith.constant 5 : index
    %c0_31 = arith.constant 0 : index
    %26 = vector.load %arg2[%c0_29, %c0_30, %c5, %c0_31] : memref<1x1x32x128xbf16, #tpu.memory_space<vmem>>, vector<1x1x16x128xbf16>
    %27 = vector.shape_cast %26 : vector<1x1x16x128xbf16> to vector<16x128xbf16>
    %c640 = arith.constant 640 : index
    %c0_32 = arith.constant 0 : index
    %28 = vector.load %arg3[%c640, %c0_32] : memref<1152x128xbf16, #tpu.memory_space<vmem>>, vector<128x128xbf16>
    %cst_33 = arith.constant dense<0.000000e+00> : vector<16x128xf32>
    %29 = tpu.matmul %27, %28, %cst_33 {dimension_numbers = #tpu.dot_dimension_numbers<[1], [0], [0], [1], [0, 0, 1, 1], [], []>} : vector<16x128xbf16>, vector<128x128xbf16>, vector<16x128xf32> -> vector<16x128xf32>
    %30 = arith.addf %25, %29 : vector<16x128xf32>
    %c0_34 = arith.constant 0 : index
    %c0_35 = arith.constant 0 : index
    %c6 = arith.constant 6 : index
    %c0_36 = arith.constant 0 : index
    %31 = vector.load %arg2[%c0_34, %c0_35, %c6, %c0_36] : memref<1x1x32x128xbf16, #tpu.memory_space<vmem>>, vector<1x1x16x128xbf16>
    %32 = vector.shape_cast %31 : vector<1x1x16x128xbf16> to vector<16x128xbf16>
    %c768 = arith.constant 768 : index
    %c0_37 = arith.constant 0 : index
    %33 = vector.load %arg3[%c768, %c0_37] : memref<1152x128xbf16, #tpu.memory_space<vmem>>, vector<128x128xbf16>
    %cst_38 = arith.constant dense<0.000000e+00> : vector<16x128xf32>
    %34 = tpu.matmul %32, %33, %cst_38 {dimension_numbers = #tpu.dot_dimension_numbers<[1], [0], [0], [1], [0, 0, 1, 1], [], []>} : vector<16x128xbf16>, vector<128x128xbf16>, vector<16x128xf32> -> vector<16x128xf32>
    %35 = arith.addf %30, %34 : vector<16x128xf32>
    %c0_39 = arith.constant 0 : index
    %c0_40 = arith.constant 0 : index
    %c7 = arith.constant 7 : index
    %c0_41 = arith.constant 0 : index
    %36 = vector.load %arg2[%c0_39, %c0_40, %c7, %c0_41] : memref<1x1x32x128xbf16, #tpu.memory_space<vmem>>, vector<1x1x16x128xbf16>
    %37 = vector.shape_cast %36 : vector<1x1x16x128xbf16> to vector<16x128xbf16>
    %c896 = arith.constant 896 : index
    %c0_42 = arith.constant 0 : index
    %38 = vector.load %arg3[%c896, %c0_42] : memref<1152x128xbf16, #tpu.memory_space<vmem>>, vector<128x128xbf16>
    %cst_43 = arith.constant dense<0.000000e+00> : vector<16x128xf32>
    %39 = tpu.matmul %37, %38, %cst_43 {dimension_numbers = #tpu.dot_dimension_numbers<[1], [0], [0], [1], [0, 0, 1, 1], [], []>} : vector<16x128xbf16>, vector<128x128xbf16>, vector<16x128xf32> -> vector<16x128xf32>
    %40 = arith.addf %35, %39 : vector<16x128xf32>
    %c0_44 = arith.constant 0 : index
    %c0_45 = arith.constant 0 : index
    %c8 = arith.constant 8 : index
    %c0_46 = arith.constant 0 : index
    %41 = vector.load %arg2[%c0_44, %c0_45, %c8, %c0_46] : memref<1x1x32x128xbf16, #tpu.memory_space<vmem>>, vector<1x1x16x128xbf16>
    %42 = vector.shape_cast %41 : vector<1x1x16x128xbf16> to vector<16x128xbf16>
    %c1024 = arith.constant 1024 : index
    %c0_47 = arith.constant 0 : index
    %43 = vector.load %arg3[%c1024, %c0_47] : memref<1152x128xbf16, #tpu.memory_space<vmem>>, vector<128x128xbf16>
    %cst_48 = arith.constant dense<0.000000e+00> : vector<16x128xf32>
    %44 = tpu.matmul %42, %43, %cst_48 {dimension_numbers = #tpu.dot_dimension_numbers<[1], [0], [0], [1], [0, 0, 1, 1], [], []>} : vector<16x128xbf16>, vector<128x128xbf16>, vector<16x128xf32> -> vector<16x128xf32>
    %45 = arith.addf %40, %44 : vector<16x128xf32>
    %46 = vector.broadcast %0 : vector<1x128xf32> to vector<16x128xf32>
    %47 = arith.addf %45, %46 : vector<16x128xf32>
    %48 = arith.negf %47 : vector<16x128xf32>
    %49 = math.exp %48 : vector<16x128xf32>
    %cst_49 = arith.constant 1.000000e+00 : f32
    %50 = vector.broadcast %cst_49 : f32 to vector<16x128xf32>
    %51 = arith.addf %50, %49 : vector<16x128xf32>
    %52 = arith.divf %50, %51 : vector<16x128xf32>
    %53 = arith.mulf %47, %52 : vector<16x128xf32>
    %54 = arith.truncf %53 : vector<16x128xf32> to vector<16x128xbf16>
    %c0_50 = arith.constant 0 : index
    %c0_51 = arith.constant 0 : index
    %55 = vector.load %arg5[%c0_50, %c0_51] : memref<128x128xbf16, #tpu.memory_space<vmem>>, vector<128x128xbf16>
    %cst_52 = arith.constant dense<0.000000e+00> : vector<16x128xf32>
    %56 = tpu.matmul %54, %55, %cst_52 {dimension_numbers = #tpu.dot_dimension_numbers<[1], [0], [0], [1], [0, 0, 1, 1], [], []>} : vector<16x128xbf16>, vector<128x128xbf16>, vector<16x128xf32> -> vector<16x128xf32>
    %57 = vector.broadcast %1 : vector<1x128xf32> to vector<16x128xf32>
    %58 = arith.addf %56, %57 : vector<16x128xf32>
    %c0_53 = arith.constant 0 : index
    %c0_54 = arith.constant 0 : index
    %c4_55 = arith.constant 4 : index
    %c0_56 = arith.constant 0 : index
    %59 = vector.load %arg2[%c0_53, %c0_54, %c4_55, %c0_56] : memref<1x1x32x128xbf16, #tpu.memory_space<vmem>>, vector<1x1x16x128xbf16>
    %60 = vector.shape_cast %59 : vector<1x1x16x128xbf16> to vector<16x128xbf16>
    %61 = arith.extf %60 : vector<16x128xbf16> to vector<16x128xf32>
    %62 = arith.addf %58, %61 : vector<16x128xf32>
    %63 = tpu.transpose %62, [1, 0] : vector<16x128xf32> -> vector<128x16xf32>
    %c0_57 = arith.constant 0 : index
    %c0_58 = arith.constant 0 : index
    %c0_59 = arith.constant 0 : index
    %64 = vector.load %arg7[%c0_57, %c0_58, %c0_59] : memref<1x128x16xf32, #tpu.memory_space<vmem>>, vector<1x128x16xf32>
    %65 = vector.shape_cast %64 : vector<1x128x16xf32> to vector<128x16xf32>
    %66 = vector.shape_cast %63 : vector<128x16xf32> to vector<1x128x16xf32>
    tpu.vector_store %arg7[%c0_57, %c0_58, %c0_59], %66 {strides = array<i32>} : memref<1x128x16xf32, #tpu.memory_space<vmem>>, vector<1x128x16xf32>,
    return
  }
  func.func @transform_0(%arg0: i32, %arg1: i32) -> (i32, i32, i32, i32) {
    %c0_i32 = arith.constant 0 : i32
    %c0_i32_0 = arith.constant 0 : i32
    %c0_i32_1 = arith.constant 0 : i32
    return %arg0, %arg1, %c0_i32, %c0_i32_0 : i32, i32, i32, i32
  }
  func.func @transform_1(%arg0: i32, %arg1: i32) -> (i32, i32) {
    %c0_i32 = arith.constant 0 : i32
    %c0_i32_0 = arith.constant 0 : i32
    %c0_i32_1 = arith.constant 0 : i32
    return %c0_i32, %c0_i32_0 : i32, i32
  }
  func.func @transform_2(%arg0: i32, %arg1: i32) -> (i32, i32) {
    %c0_i32 = arith.constant 0 : i32
    %c0_i32_0 = arith.constant 0 : i32
    %c0_i32_1 = arith.constant 0 : i32
    return %c0_i32, %c0_i32_0 : i32, i32
  }
  func.func @transform_3(%arg0: i32, %arg1: i32) -> (i32, i32) {
    %c0_i32 = arith.constant 0 : i32
    %c0_i32_0 = arith.constant 0 : i32
    %c0_i32_1 = arith.constant 0 : i32
    return %c0_i32, %c0_i32_0 : i32, i32
  }
  func.func @transform_4(%arg0: i32, %arg1: i32) -> (i32, i32) {
    %c0_i32 = arith.constant 0 : i32
    %c0_i32_0 = arith.constant 0 : i32
    %c0_i32_1 = arith.constant 0 : i32
    return %c0_i32, %c0_i32_0 : i32, i32
  }
  func.func @transform_5(%arg0: i32, %arg1: i32) -> (i32, i32, i32) {
    %c0_i32 = arith.constant 0 : i32
    %c0_i32_0 = arith.constant 0 : i32
    return %arg0, %c0_i32, %arg1 : i32, i32, i32
  }
}

</mosaic_0001>

<bundles_post_ra>
// kernel: conv_block_pallas.1
= control target key start
LH: loop header
LB: loop body
LE: loop exit
PB: predicated region body
PF: predicated region fallthrough
CT: control target
= control target key end

     0   :  { %s2205_s18 = smov 0   ;;  %s2207_s19 = smov 0   ;;  %s2669_s0 = inlined_call_operand.vmem [shape: bf16[2,1,32,128], index: 0, kind: input, shape index: {}]   ;;  %s2670_s1 = inlined_call_operand.vmem [shape: bf16[1152,128], index: 1, kind: input, shape index: {}]   ;;  %s2671_s2 = inlined_call_operand.vmem [shape: f32[1,128], index: 2, kind: input, shape index: {}]   ;;  %s2672_s3 = inlined_call_operand.vmem [shape: bf16[128,128], index: 3, kind: input, shape index: {}]   ;;  %s2673_s4 = inlined_call_operand.vmem [shape: f32[1,128], index: 4, kind: input, shape index: {}]   ;;  %s2674_s5 = inlined_call_operand.vmem [shape: f32[2,128,16], index: 5, kind: output, shape index: {}]  }
   0x1   :  { %s2209_s20 = smov 0  }
   0x2 LB: > { %s27_s21 = sadd.s32 1, %s2167_s19  ;;  %p1634_p0 = scmp.ge.s32.totalorder %s2171_s20, 1  ;;  %s2171_s20 = sphi %s2209_s20, %s15_s20   ;;  %s2167_s19 = sphi %s2207_s19, %s2676_s19   ;;  %s2163_s18 = sphi %s2205_s18, %s2675_s18  }
   0x3   : > { %p29_p1 = scmp.ge.s32.totalorder %s27_s21, 2  ;;  %p207_p2 = scmp.lt.s32.totalorder %s2171_s20, 3 }
   0x5   : > { %s2678_s21 = smov (%p29_p1, %s27_s21), 0  ;;  %p208_p3 = pnand %p1634_p0, %p207_p2 }
   0x6   : > { %v2052_v0 = vld [vmem:[%s2670_s1 + $0x40] sm:$0xff] (!%p208_p3)   ;;  %v2173_v1 = vmov (!%p208_p3), 0.0   ;;  %v2054_v3 = vld [vmem:[%s2670_s1 + $0x48] sm:$0xff] (!%p208_p3)   ;;  %vm2174_vm0 = vmmov (!%p208_p3), 0   ;;  %p242_p4 = scmp.lt.s32.totalorder (!%p208_p3), %s2163_s18, 1  ;;  %v2056_v5 = vld [vmem:[%s2670_s1 + $0x50] sm:$0xff] (!%p208_p3)  }
   0x7   : > { %211 = sbr.rel (%p208_p3) target bundleno = 821 (0x335), region = 40  ;;  %1826 = vmatprep.subr.bf16.mxu0 (!%p208_p3), %v2173_v1  ;;  %1846 = vmatprep.subr.bf16.mxu1 (!%p208_p3), %v2173_v1  ;;  %v2053_v2 = vld [vmem:[%s2670_s1] sm:$0xff] (!%p208_p3)   ;;  %v2055_v4 = vld [vmem:[%s2670_s1 + $0x8] sm:$0xff] (!%p208_p3)   ;;  %v2057_v6 = vld [vmem:[%s2670_s1 + $0x10] sm:$0xff] (!%p208_p3)   ;;  %vm305_vm1 = vsmask.f32 (!%p208_p3), 7424 }
   0x8   : > { %1827 = vmatpush3.bf16.msra.mxu0 (!%p208_p3), %v2052_v0  ;;  %1842 = vmatprep.mubr.msk.bf16.mxu0 (!%p208_p3), %vm2174_vm0, %v2173_v1  ;;  %v2058_v7 = vld [vmem:[%s2670_s1 + $0x58] sm:$0xff] (!%p208_p3)   ;;  %v2060_v9 = vld [vmem:[%s2670_s1 + $0x60] sm:$0xff] (!%p208_p3)   ;;  %v2062_v13 = vld [vmem:[%s2670_s1 + $0x68] sm:$0xff] (!%p208_p3)   ;;  %vm518_vm2 = vcmask (!%p208_p3), 1046528   ;;  %vm634_vm3 = vsmask.f32 (!%p208_p3), 6400 }
   0x9   : > { %1847 = vmatpush3.bf16.msra.mxu1 (!%p208_p3), %v2053_v2  ;;  %1828 = vmatprep.subr.bf16.mxu0 (!%p208_p3), %v2173_v1  ;;  %v2059_v8 = vld [vmem:[%s2670_s1 + $0x18] sm:$0xff] (!%p208_p3)   ;;  %v2061_v10 = vld [vmem:[%s2670_s1 + $0x20] sm:$0xff] (!%p208_p3)   ;;  %v2063_v16 = vld [vmem:[%s2670_s1 + $0x28] sm:$0xff] (!%p208_p3)   ;;  %vm764_vm4 = vcmask (!%p208_p3), 1045504   ;;  %vm880_vm5 = vsmask.f32 (!%p208_p3), 5376 }
   0xa   : > { %1848 = vmatprep.subr.bf16.mxu1 (!%p208_p3), %v2173_v1  ;;  %1862 = vmatprep.mubr.msk.bf16.mxu1 (!%p208_p3), %vm2174_vm0, %v2173_v1  ;;  %v2064_v18 = vld [vmem:[%s2670_s1 + $0x70] sm:$0xff] (!%p208_p3)   ;;  %v2066_v23 = vld [vmem:[%s2670_s1 + $0x78] sm:$0xff] (!%p208_p3)   ;;  %v2070_v28 = vld [vmem:[%s2670_s1 + $0x80] sm:$0xff] (!%p208_p3)   ;;  %vm1010_vm6 = vcmask (!%p208_p3), 1044480   ;;  %vm1126_vm7 = vsmask.f32 (!%p208_p3), 4352 }
   0xb   : > { %v2065_v22 = vld [vmem:[%s2670_s1 + $0x30] sm:$0xff] (!%p208_p3)   ;;  %v2067_v24 = vld [vmem:[%s2670_s1 + $0x38] sm:$0xff] (!%p208_p3)   ;;  %v2071_v29 = vld [vmem:[%s2670_s1 + $0xc0] sm:$0xff] (!%p208_p3)   ;;  %vm1485_vm8 = vcmask (!%p208_p3), 1043456   ;;  %vm1527_vm9 = vcmask (!%p208_p3), 130048  }
   0xc   : > { %1829 = vmatpush3.bf16.msra.mxu0 (!%p208_p3), %v2054_v3  ;;  %v2072_v30 = vld [vmem:[%s2670_s1 + $0x88] sm:$0xff] (!%p208_p3)   ;;  %v2074_v32 = vld [vmem:[%s2670_s1 + $0x90] sm:$0xff] (!%p208_p3)   ;;  %v2076_v34 = vld [vmem:[%s2670_s1 + $0x98] sm:$0xff] (!%p208_p3)  }
   0xd   : > { %1849 = vmatpush3.bf16.msra.mxu1 (!%p208_p3), %v2055_v4  ;;  %1830 = vmatprep.subr.bf16.mxu0 (!%p208_p3), %v2173_v1  ;;  %v2073_v31 = vld [vmem:[%s2670_s1 + $0xc8] sm:$0xff] (!%p208_p3)   ;;  %v2075_v33 = vld [vmem:[%s2670_s1 + $0xd0] sm:$0xff] (!%p208_p3)   ;;  %v2077_v35 = vld [vmem:[%s2670_s1 + $0xd8] sm:$0xff] (!%p208_p3)  }
   0xe   : > { %s2680_s18 = smov (!%p242_p4, %s2163_s18), 1  ;;  %1850 = vmatprep.subr.bf16.mxu1 %v2173_v1  ;;  %v2078_v38 = vld [vmem:[%s2670_s1 + $0xa0] sm:$0xff]   ;;  %v2080_v42 = vld [vmem:[%s2670_s1 + $0xa8] sm:$0xff]   ;;  %v2082_v48 = vld [vmem:[%s2670_s1 + $0xb0] sm:$0xff]  }
   0xf   : > { %s1734_s11 = sshll.u32 %s2680_s18, 4  ;;  %v2079_v40 = vld [vmem:[%s2670_s1 + $0xe0] sm:$0xff]   ;;  %v2081_v43 = vld [vmem:[%s2670_s1 + $0xe8] sm:$0xff]   ;;  %v2083_v49 = vld [vmem:[%s2670_s1 + $0xf0] sm:$0xff]   ;;  %s1735_s26 = sshll.u32 %s2680_s18, 7 }
  0x10   : > { %1831 = vmatpush3.bf16.msra.mxu0 %v2056_v5  ;;  %s2265_s16 = scalar_lea.vmem %s2669_s0, %s1734_s11  ;;  %v2084_v54 = vld [vmem:[%s2670_s1 + $0xb8] sm:$0xff]   ;;  %v2087_v61 = vld [vmem:[%s2670_s1 + $0x100] sm:$0xff]   ;;  %v2090_v0 = vld [vmem:[%s2670_s1 + $0x108] sm:$0xff]   ;;  %s2626_s29 = scalar_lea.vmem %s2674_s5, %s1735_s26 }
  0x11   : > { %1851 = vmatpush3.bf16.msra.mxu1 %v2057_v6  ;;  %1832 = vmatprep.subr.bf16.mxu0 %v2173_v1  ;;  %v262_v11 = vld [vmem:[%s2265_s16] sm:$0xf]  ;;  %v2277_v12 = vld [vmem:[%s2265_s16 + $0x4] sm:$0xf]  ;;  %v2346_v37 = vld [vmem:[%s2265_s16 + $0x8] sm:$0x3] }
  0x12   : > { %1852 = vmatprep.subr.bf16.mxu1 %v2173_v1  ;;  %v1639_v14 = vcombine.low %v262_v11, %v2277_v12  ;;  %v2284_v15 = vld [vmem:[%s2265_s16 + $0x8] ss:$0 sps:$4 sm:$0x11]   ;;  %v498_v36 = vld [vmem:[%s2265_s16] sm:$0xe]  ;;  %v2358_v41 = vcombine.low %v2346_v37, %v2346_v37  ;;  %v2085_v55 = vld [vmem:[%s2670_s1 + $0xf8] sm:$0xff]  }
  0x13   : > { %v314_v21 = vshll.u32 %v2284_v15, 16  ;;  %v1657_v39 = vcombine.low %v498_v36, %v2277_v12  ;;  %v520_v57 = vrot.slane %v2284_v15, 1  ;;  %v2089_v63 = vld [vmem:[%s2670_s1 + $0x140] sm:$0xff]   ;;  %v2091_v2 = vld [vmem:[%s2670_s1 + $0x148] sm:$0xff]   ;;  %v2092_v3 = vld [vmem:[%s2670_s1 + $0x110] sm:$0xff]  }
  0x14   : > { %1833 = vmatpush3.bf16.msra.mxu0 %v2058_v7  ;;  %v309_v17 = vshll.u32 %v1639_v14, 16  ;;  %v307_v19 = vshrl.u32 %v1639_v14, 16  ;;  %v644_v46 = vshrl.u32 %v2358_v41, 16  ;;  %v647_v47 = vshll.u32 %v2358_v41, 16  ;;  %v2093_v4 = vld [vmem:[%s2670_s1 + $0x150] sm:$0xff]   ;;  %v2094_v6 = vld [vmem:[%s2670_s1 + $0x118] sm:$0xff]  }
  0x15   : > { %1853 = vmatpush3.bf16.msra.mxu1 %v2059_v8  ;;  %1834 = vmatprep.subr.bf16.mxu0 %v2173_v1  ;;  %v316_v26 = vrot.slane %v314_v21, 1  ;;  %v636_v44 = vshrl.u32 %v1657_v39, 16  ;;  %v639_v45 = vshll.u32 %v1657_v39, 16  ;;  %v519_v56 = vrot.slane %v1657_v39, 1  ;;  %v2416_v5 = vld [vmem:[%s2265_s16] sm:$0xc] }
  0x16   : > { %1854 = vmatprep.subr.bf16.mxu1 %v2173_v1  ;;  %v311_v20 = vrot.slane %v309_v17, 1  ;;  %v646_v52 = vrot.slane %v644_v46, 1  ;;  %v649_v53 = vrot.slane %v647_v47, 2  ;;  %v1675_v7 = vcombine.low %v2416_v5, %v2277_v12  ;;  %v2095_v8 = vld [vmem:[%s2670_s1 + $0x158] sm:$0xff]   ;;  %v2097_v11 = vld [vmem:[%s2670_s1 + $0x160] sm:$0xff]   ;;  %v2098_v15 = vld [vmem:[%s2670_s1 + $0x128] sm:$0xff]  }
  0x17   : > { %v638_v50 = vrot.slane %v636_v44, 1  ;;  %v641_v51 = vrot.slane %v639_v45, 2  ;;  %v521_v60 = vsel %vm518_vm2, %v519_v56, %v520_v57  ;;  %v2109_v36 = vld [vmem:[%s2670_s1 + $0x1c8] sm:$0xff]   ;;  %v2111_v39 = vld [vmem:[%s2670_s1 + $0x1d0] sm:$0xff]   ;;  %v2114_v44 = vld [vmem:[%s2670_s1 + $0x1a0] sm:$0xff]  }
  0x18   : > { %1835 = vmatpush3.bf16.msra.mxu0 %v2060_v9  ;;  %v312_v25 = vor.u32 %v311_v20, %v307_v19  ;;  %v650_v59 = vor.u32 %v649_v53, %v646_v52  ;;  %v2429_v9 = vld [vmem:[%s2265_s16 + $0x8] ss:$0 sps:$4 sm:$0x77]   ;;  %v2100_v19 = vld [vmem:[%s2670_s1 + $0x130] sm:$0xff]   ;;  %v2115_v45 = vld [vmem:[%s2670_s1 + $0x1e0] sm:$0xff]  }
  0x19   : > { %1855 = vmatpush3.bf16.msra.mxu1 %v2061_v10  ;;  %1836 = vmatprep.subr.bf16.mxu0 %v2173_v1  ;;  %v642_v58 = vor.u32 %v641_v51, %v638_v50  ;;  %v2096_v10 = vld [vmem:[%s2670_s1 + $0x120] sm:$0xff]   ;;  %v893_v17 = vshll.u32 %v2429_v9, 16  ;;  %v2101_v20 = vld [vmem:[%s2670_s1 + $0x170] sm:$0xff]  }
  0x1a   : > { %1856 = vmatprep.subr.bf16.mxu1 %v2173_v1  ;;  %v317_v27 = vsel %vm305_vm1, %v312_v25, %v316_v26  ;;  %v2102_v25 = vld [vmem:[%s2670_s1 + $0x138] sm:$0xff]   ;;  %v765_v26 = vrot.slane %v1675_v7, 2 }
  0x1b   : > { %v651_v62 = vsel %vm634_vm3, %v642_v58, %v650_v59 }
  0x1c   : > { %1837 = vmatpush3.bf16.msra.mxu0 %v2062_v13  ;;  %v882_v13 = vshrl.u32 %v1675_v7, 16 }
  0x1d   : > { %1857 = vmatpush3.bf16.msra.mxu1 %v2063_v16  ;;  %1838 = vmatprep.subr.bf16.mxu0 %v2173_v1  ;;  %v890_v16 = vshrl.u32 %v2429_v9, 16 }
  0x1e   : > { %1858 = vmatprep.subr.bf16.mxu1 %v2173_v1  ;;  %v884_v21 = vrot.slane %v882_v13, 2  ;;  %v2130_v13 = vld [vmem:[%s2670_s1 + $0x230] sm:$0xff]  }
  0x20   : > { %1839 = vmatpush3.bf16.msra.mxu0 %v2064_v18  ;;  %v2099_v18 = vld [vmem:[%s2670_s1 + $0x168] sm:$0xff]  }
  0x21   : > { %1859 = vmatpush3.bf16.msra.mxu1 %v2065_v22  ;;  %1840 = vmatprep.subr.bf16.mxu0 %v2173_v1 }
  0x22   : > { %1860 = vmatprep.subr.bf16.mxu1 %v2173_v1 }
  0x24   : > { %1841 = vmatpush3.bf16.msra.mxu0 %v2066_v23  ;;  %v892_v23 = vrot.slane %v890_v16, 2 }
  0x25   : > { %1861 = vmatpush3.bf16.msra.mxu1 %v2067_v24  ;;  %1866 = vmatprep.subr.bf16.mxu0 %v2173_v1  ;;  %v895_v24 = vrot.slane %v893_v17, 3 }
  0x26   : > { %1886 = vmatprep.subr.bf16.mxu1 %v2173_v1 }
  0x27   : > { %1843 = vmatmul.mubr.bf16.vlgmr.msra.gmra.mrb[0].mxu0 %v317_v27  ;;  %v766_v27 = vrot.slane %v2358_v41, 2  ;;  %v2113_v41 = vld [vmem:[%s2670_s1 + $0x1d8] sm:$0xff]  }
  0x28   : > { %1863 = vmatmul.mubr.bf16.vlgmr.msra.gmra.mrb[0].mxu1 %v1639_v14  ;;  %1867 = vmatpush3.bf16.msra.mxu0 %v2070_v28  ;;  %v885_v14 = vshll.u32 %v1675_v7, 16  ;;  %v2103_v28 = vld [vmem:[%s2670_s1 + $0x178] sm:$0xff]   ;;  %v2125_v7 = vld [vmem:[%s2670_s1 + $0x208] sm:$0xff]  }
  0x29   : > { %1887 = vmatpush3.bf16.msra.mxu1 %v2071_v29  ;;  %1868 = vmatprep.subr.bf16.mxu0 %v2173_v1 }
  0x2a   : > { %1888 = vmatprep.subr.bf16.mxu1 %v2173_v1  ;;  %1882 = vmatprep.mubr.msk.bf16.mxu0 %vm2174_vm0, %v2173_v1  ;;  %v887_v22 = vrot.slane %v885_v14, 3  ;;  %v2131_v14 = vld [vmem:[%s2670_s1 + $0x238] sm:$0xff]  }
  0x2b   : > { %1902 = vmatprep.mubr.msk.bf16.mxu1 %vm2174_vm0, %v2173_v1 }
  0x2c   : > { %1869 = vmatpush3.bf16.msra.mxu0 %v2072_v30  ;;  %v888_v29 = vor.u32 %v887_v22, %v884_v21  ;;  %v896_v30 = vor.u32 %v895_v24, %v892_v23 }
  0x2d   : > { %1889 = vmatpush3.bf16.msra.mxu1 %v2073_v31  ;;  %1870 = vmatprep.subr.bf16.mxu0 %v2173_v1  ;;  %v767_v31 = vsel %vm764_vm4, %v765_v26, %v766_v27  ;;  %v2133_v26 = vld [vmem:[%s2672_s3] sm:$0xff]   ;;  %v2134_v27 = vld [vmem:[%s2672_s3 + $0x8] sm:$0xff]  }
  0x2e   : > { %1890 = vmatprep.subr.bf16.mxu1 %v2173_v1 }
  0x30   : > { %1871 = vmatpush3.bf16.msra.mxu0 %v2074_v32  ;;  %v2105_v32 = vld [vmem:[%s2670_s1 + $0x180] sm:$0xff]  }
  0x31   : > { %1891 = vmatpush3.bf16.msra.mxu1 %v2075_v33  ;;  %1872 = vmatprep.subr.bf16.mxu0 %v2173_v1  ;;  %v897_v33 = vsel %vm880_vm5, %v888_v29, %v896_v30  ;;  %v2136_v29 = vld [vmem:[%s2672_s3 + $0x18] sm:$0xff]   ;;  %v2137_v30 = vld [vmem:[%s2672_s3 + $0x20] sm:$0xff]  }
  0x32   : > { %1892 = vmatprep.subr.bf16.mxu1 %v2173_v1 }
  0x34   : > { %1873 = vmatpush3.bf16.msra.mxu0 %v2076_v34  ;;  %v2107_v34 = vld [vmem:[%s2670_s1 + $0x1c0] sm:$0xff]  }
  0x35   : > { %1893 = vmatpush3.bf16.msra.mxu1 %v2077_v35  ;;  %1874 = vmatprep.subr.bf16.mxu0 %v2173_v1  ;;  %v2108_v35 = vld [vmem:[%s2670_s1 + $0x188] sm:$0xff]  }
  0x36   : > { %1894 = vmatprep.subr.bf16.mxu1 %v2173_v1 }
  0x38   : > { %1875 = vmatpush3.bf16.msra.mxu0 %v2078_v38  ;;  %v2110_v38 = vld [vmem:[%s2670_s1 + $0x190] sm:$0xff]  }
  0x39   : > { %1895 = vmatpush3.bf16.msra.mxu1 %v2079_v40  ;;  %1876 = vmatprep.subr.bf16.mxu0 %v2173_v1  ;;  %v2112_v40 = vld [vmem:[%s2670_s1 + $0x198] sm:$0xff]  }
  0x3a   : > { %1896 = vmatprep.subr.bf16.mxu1 %v2173_v1 }
  0x3c   : > { %1877 = vmatpush3.bf16.msra.mxu0 %v2080_v42  ;;  %v990_v42 = vld [vmem:[%s2265_s16] sm:$0x8] }
  0x3d   : > { %1897 = vmatpush3.bf16.msra.mxu1 %v2081_v43  ;;  %1878 = vmatprep.subr.bf16.mxu0 %v2173_v1  ;;  %v2505_v43 = vld [vmem:[%s2265_s16 + $0x8] sm:$0xf]  ;;  %v1693_v46 = vcombine.low %v990_v42, %v2277_v12 }
  0x3e   : > { %1898 = vmatprep.subr.bf16.mxu1 %v2173_v1  ;;  %v1702_v47 = vcombine.low %v2505_v43, %v2505_v43 }
  0x3f   : > { %v1128_v50 = vshrl.u32 %v1693_v46, 16  ;;  %v1131_v51 = vshll.u32 %v1693_v46, 16 }
  0x40   : > { %1879 = vmatpush3.bf16.msra.mxu0 %v2082_v48  ;;  %v2116_v48 = vld [vmem:[%s2670_s1 + $0x1a8] sm:$0xff]   ;;  %v1136_v52 = vshrl.u32 %v1702_v47, 16  ;;  %v1139_v53 = vshll.u32 %v1702_v47, 16 }
  0x41   : > { %1899 = vmatpush3.bf16.msra.mxu1 %v2083_v49  ;;  %1880 = vmatprep.subr.bf16.mxu0 %v2173_v1  ;;  %v2117_v49 = vld [vmem:[%s2670_s1 + $0x1e8] sm:$0xff]   ;;  %v1130_v56 = vrot.slane %v1128_v50, 3  ;;  %v1133_v57 = vrot.slane %v1131_v51, 4 }
  0x42   : > { %1900 = vmatprep.subr.bf16.mxu1 %v2173_v1  ;;  %v1138_v58 = vrot.slane %v1136_v52, 3  ;;  %v1141_v59 = vrot.slane %v1139_v53, 4 }
  0x44   : > { %1881 = vmatpush3.bf16.msra.mxu0 %v2084_v54  ;;  %v2118_v54 = vld [vmem:[%s2670_s1 + $0x1b0] sm:$0xff]  }
  0x45   : > { %1901 = vmatpush3.bf16.msra.mxu1 %v2085_v55  ;;  %1906 = vmatprep.subr.bf16.mxu0 %v2173_v1  ;;  %v2119_v55 = vld [vmem:[%s2670_s1 + $0x1f0] sm:$0xff]  }
  0x46   : > { %1926 = vmatprep.subr.bf16.mxu1 %v2173_v1 }
  0x47   : > { %1883 = vmatmul.mubr.bf16.vlgmr.msra.gmra.mrb[4].mxu0 %v521_v60  ;;  %v2120_v60 = vld [vmem:[%s2670_s1 + $0x1b8] sm:$0xff]  }
  0x48   : > { %1907 = vmatpush3.bf16.msra.mxu0 %v2087_v61  ;;  %1903 = vmatmul.mubr.bf16.vlgmr.msra.gmra.mrb[4].mxu1 %v651_v62  ;;  %v1011_v61 = vrot.slane %v1693_v46, 3  ;;  %v1012_v62 = vrot.slane %v2429_v9, 3  ;;  %v2127_v9 = vld [vmem:[%s2670_s1 + $0x218] sm:$0xff]  }
  0x49   : > { %1927 = vmatpush3.bf16.msra.mxu1 %v2089_v63  ;;  %1908 = vmatprep.subr.bf16.mxu0 %v2173_v1  ;;  %v2121_v63 = vld [vmem:[%s2670_s1 + $0x1f8] sm:$0xff]  }
  0x4a   : > { %1928 = vmatprep.subr.bf16.mxu1 %v2173_v1  ;;  %1922 = vmatprep.mubr.msk.bf16.mxu0 %vm2174_vm0, %v2173_v1 }
  0x4b   : > { %1942 = vmatprep.mubr.msk.bf16.mxu1 %vm2174_vm0, %v2173_v1 }
  0x4c   : > { %1909 = vmatpush3.bf16.msra.mxu0 %v2090_v0  ;;  %v1134_v0 = vor.u32 %v1133_v57, %v1130_v56 }
  0x4d   : > { %1929 = vmatpush3.bf16.msra.mxu1 %v2091_v2  ;;  %1910 = vmatprep.subr.bf16.mxu0 %v2173_v1  ;;  %v1142_v2 = vor.u32 %v1141_v59, %v1138_v58 }
  0x4e   : > { %1930 = vmatprep.subr.bf16.mxu1 %v2173_v1 }
  0x50   : > { %1911 = vmatpush3.bf16.msra.mxu0 %v2092_v3  ;;  %v1013_v3 = vsel %vm1010_vm6, %v1011_v61, %v1012_v62 }
  0x51   : > { %1931 = vmatpush3.bf16.msra.mxu1 %v2093_v4  ;;  %1912 = vmatprep.subr.bf16.mxu0 %v2173_v1  ;;  %v2123_v4 = vld [vmem:[%s2670_s1 + $0x200] sm:$0xff]  }
  0x52   : > { %1932 = vmatprep.subr.bf16.mxu1 %v2173_v1 }
  0x54   : > { %1913 = vmatpush3.bf16.msra.mxu0 %v2094_v6  ;;  %v1143_v6 = vsel %vm1126_vm7, %v1134_v0, %v1142_v2 }
  0x55   : > { %1933 = vmatpush3.bf16.msra.mxu1 %v2095_v8  ;;  %1914 = vmatprep.subr.bf16.mxu0 %v2173_v1  ;;  %v2126_v8 = vld [vmem:[%s2670_s1 + $0x210] sm:$0xff]  }
  0x56   : > { %1934 = vmatprep.subr.bf16.mxu1 %v2173_v1 }
  0x58   : > { %1915 = vmatpush3.bf16.msra.mxu0 %v2096_v10  ;;  %v2128_v10 = vld [vmem:[%s2670_s1 + $0x220] sm:$0xff]  }
  0x59   : > { %1935 = vmatpush3.bf16.msra.mxu1 %v2097_v11  ;;  %1916 = vmatprep.subr.bf16.mxu0 %v2173_v1  ;;  %v2129_v11 = vld [vmem:[%s2670_s1 + $0x228] sm:$0xff]  }
  0x5a   : > { %1936 = vmatprep.subr.bf16.mxu1 %v2173_v1 }
  0x5c   : > { %1917 = vmatpush3.bf16.msra.mxu0 %v2098_v15  ;;  %v1711_v15 = vcombine.low %v2277_v12, %v2505_v43 }
  0x5d   : > { %1937 = vmatpush3.bf16.msra.mxu1 %v2099_v18  ;;  %1918 = vmatprep.subr.bf16.mxu0 %v2173_v1 }
  0x5e   : > { %1938 = vmatprep.subr.bf16.mxu1 %v2173_v1 }
  0x60   : > { %1919 = vmatpush3.bf16.msra.mxu0 %v2100_v19 }
  0x61   : > { %1939 = vmatpush3.bf16.msra.mxu1 %v2101_v20  ;;  %1920 = vmatprep.subr.bf16.mxu0 %v2173_v1 }
  0x62   : > { %1940 = vmatprep.subr.bf16.mxu1 %v2173_v1 }
  0x64   : > { %1921 = vmatpush3.bf16.msra.mxu0 %v2102_v25 }
  0x65   : > { %1941 = vmatpush3.bf16.msra.mxu1 %v2103_v28  ;;  %1946 = vmatprep.subr.bf16.mxu0 %v2173_v1  ;;  %v2135_v28 = vld [vmem:[%s2672_s3 + $0x10] sm:$0xff]  }
  0x66   : > { %1966 = vmatprep.subr.bf16.mxu1 %v2173_v1 }
  0x67   : > { %1923 = vmatmul.mubr.bf16.vlgmr.msra.gmra.mrb[8].mxu0 %v767_v31  ;;  %v2138_v31 = vld [vmem:[%s2672_s3 + $0x28] sm:$0xff]  }
  0x68   : > { %1947 = vmatpush3.bf16.msra.mxu0 %v2105_v32  ;;  %1943 = vmatmul.mubr.bf16.vlgmr.msra.gmra.mrb[8].mxu1 %v897_v33  ;;  %v2139_v32 = vld [vmem:[%s2672_s3 + $0x30] sm:$0xff]  }
  0x69   : > { %1967 = vmatpush3.bf16.msra.mxu1 %v2107_v34  ;;  %1948 = vmatprep.subr.bf16.mxu0 %v2173_v1 }
  0x6a   : > { %1968 = vmatprep.subr.bf16.mxu1 %v2173_v1  ;;  %1962 = vmatprep.mubr.msk.bf16.mxu0 %vm2174_vm0, %v2173_v1 }
  0x6b   : > { %1982 = vmatprep.mubr.msk.bf16.mxu1 %vm2174_vm0, %v2173_v1 }
  0x6c   : > { %1949 = vmatpush3.bf16.msra.mxu0 %v2108_v35 }
  0x6d   : > { %1969 = vmatpush3.bf16.msra.mxu1 %v2109_v36  ;;  %1950 = vmatprep.subr.bf16.mxu0 %v2173_v1 }
  0x6e   : > { %1970 = vmatprep.subr.bf16.mxu1 %v2173_v1 }
  0x70   : > { %1951 = vmatpush3.bf16.msra.mxu0 %v2110_v38  ;;  %v2140_v38 = vld [vmem:[%s2672_s3 + $0x38] sm:$0xff]  }
  0x71   : > { %1971 = vmatpush3.bf16.msra.mxu1 %v2111_v39  ;;  %1952 = vmatprep.subr.bf16.mxu0 %v2173_v1 }
  0x72   : > { %1972 = vmatprep.subr.bf16.mxu1 %v2173_v1 }
  0x74   : > { %1953 = vmatpush3.bf16.msra.mxu0 %v2112_v40 }
  0x75   : > { %1973 = vmatpush3.bf16.msra.mxu1 %v2113_v41  ;;  %1954 = vmatprep.subr.bf16.mxu0 %v2173_v1 }
  0x76   : > { %1974 = vmatprep.subr.bf16.mxu1 %v2173_v1 }
  0x78   : > { %1955 = vmatpush3.bf16.msra.mxu0 %v2114_v44 }
  0x79   : > { %1975 = vmatpush3.bf16.msra.mxu1 %v2115_v45  ;;  %1956 = vmatprep.subr.bf16.mxu0 %v2173_v1 }
  0x7a   : > { %1976 = vmatprep.subr.bf16.mxu1 %v2173_v1 }
  0x7c   : > { %1957 = vmatpush3.bf16.msra.mxu0 %v2116_v48 }
  0x7d   : > { %1977 = vmatpush3.bf16.msra.mxu1 %v2117_v49  ;;  %1958 = vmatprep.subr.bf16.mxu0 %v2173_v1 }
  0x7e   : > { %1978 = vmatprep.subr.bf16.mxu1 %v2173_v1 }
  0x80   : > { %1959 = vmatpush3.bf16.msra.mxu0 %v2118_v54 }
  0x81   : > { %1979 = vmatpush3.bf16.msra.mxu1 %v2119_v55  ;;  %1960 = vmatprep.subr.bf16.mxu0 %v2173_v1 }
  0x82   : > { %1980 = vmatprep.subr.bf16.mxu1 %v2173_v1 }
  0x84   : > { %1961 = vmatpush3.bf16.msra.mxu0 %v2120_v60 }
  0x85   : > { %1981 = vmatpush3.bf16.msra.mxu1 %v2121_v63  ;;  %1986 = vmatprep.subr.bf16.mxu0 %v2173_v1 }
  0x86   : > { %2006 = vmatprep.subr.bf16.mxu1 %v2173_v1 }
  0x87   : > { %1963 = vmatmul.mubr.bf16.vlgmr.msra.gmra.mrb[12].mxu0 %v1013_v3 }
  0x88   : > { %1987 = vmatpush3.bf16.msra.mxu0 %v2123_v4  ;;  %1983 = vmatmul.mubr.bf16.vlgmr.msra.gmra.mrb[12].mxu1 %v1143_v6 }
  0x89   : > { %1988 = vmatprep.subr.bf16.mxu0 %v2173_v1  ;;  %2002 = vmatprep.mubr.msk.bf16.mxu0 %vm2174_vm0, %v2173_v1 }
  0x8a   : > { %2022 = vmatprep.mubr.msk.bf16.mxu1 %vm2174_vm0, %v2173_v1  ;;  %2007 = vmatpush3.bf16.msra.mxu1 %v2133_v26 }
  0x8b   : > { %2008 = vmatprep.subr.bf16.mxu1 %v2173_v1 }
  0x8c   : > { %1989 = vmatpush3.bf16.msra.mxu0 %v2125_v7 }
  0x8d   : > { %1990 = vmatprep.subr.bf16.mxu0 %v2173_v1 }
  0x8e   : > { %2009 = vmatpush3.bf16.msra.mxu1 %v2134_v27 }
  0x8f   : > { %2010 = vmatprep.subr.bf16.mxu1 %v2173_v1 }
  0x90   : > { %1991 = vmatpush3.bf16.msra.mxu0 %v2126_v8  ;;  %v1720_v8 = vld [vmem:[%s2671_s2] ss:$0 sm:$0xff] }
  0x91   : > { %1992 = vmatprep.subr.bf16.mxu0 %v2173_v1 }
  0x92   : > { %2011 = vmatpush3.bf16.msra.mxu1 %v2135_v28 }
  0x93   : > { %2012 = vmatprep.subr.bf16.mxu1 %v2173_v1 }
  0x94   : > { %1993 = vmatpush3.bf16.msra.mxu0 %v2127_v9 }
  0x95   : > { %1994 = vmatprep.subr.bf16.mxu0 %v2173_v1 }
  0x96   : > { %2013 = vmatpush3.bf16.msra.mxu1 %v2136_v29  ;;  %v1479_v29 = vunpack.c.l.bf16 %v2416_v5 }
  0x97   : > { %2014 = vmatprep.subr.bf16.mxu1 %v2173_v1 }
  0x98   : > { %1995 = vmatpush3.bf16.msra.mxu0 %v2128_v10 }
  0x99   : > { %1996 = vmatprep.subr.bf16.mxu0 %v2173_v1 }
  0x9a   : > { %2015 = vmatpush3.bf16.msra.mxu1 %v2137_v30  ;;  %v1480_v30 = vunpack.c.l.bf16 %v2277_v12 }
  0x9b   : > { %2016 = vmatprep.subr.bf16.mxu1 %v2173_v1 }
  0x9c   : > { %1997 = vmatpush3.bf16.msra.mxu0 %v2129_v11 }
  0x9d   : > { %1998 = vmatprep.subr.bf16.mxu0 %v2173_v1 }
  0x9e   : > { %2017 = vmatpush3.bf16.msra.mxu1 %v2138_v31  ;;  %v1486_v31 = vrot.slane %v1479_v29, 4 }
  0x9f   : > { %2018 = vmatprep.subr.bf16.mxu1 %v2173_v1 }
  0xa0   : > { %1999 = vmatpush3.bf16.msra.mxu0 %v2130_v13 }
  0xa1   : > { %2000 = vmatprep.subr.bf16.mxu0 %v2173_v1 }
  0xa2   : > { %2019 = vmatpush3.bf16.msra.mxu1 %v2139_v32  ;;  %v1487_v32 = vrot.slane %v1480_v30, 4 }
  0xa3   : > { %2020 = vmatprep.subr.bf16.mxu1 %v2173_v1 }
  0xa4   : > { %2001 = vmatpush3.bf16.msra.mxu0 %v2131_v14 }
  0xa6   : > { %2021 = vmatpush3.bf16.msra.mxu1 %v2140_v38 }
  0xa7   : > { %2003 = vmatmul.mubr.bf16.vlgmr.msra.gmra.mrb[16].mxu0 %v1711_v15 }
  0xfa   : > { %v401_v16 = vpop.f32.mrb[0].mxu0 }
  0xfb   : > { %v491_v17 = vpop.f32.mrb[0].mxu1  ;;  %v1844_v18 = vpop.f32.mrb[1].mxu0 }
  0xfc   : > { %v492_v19 = vadd.f32 %v491_v17, %v401_v16  ;;  %v1864_v20 = vpop.f32.mrb[1].mxu1  ;;  %v404_v21 = vpop.f32.mrb[2].mxu0 }
  0xfd   : > { %v494_v22 = vpop.f32.mrb[2].mxu1  ;;  %v1845_v23 = vpop.f32.mrb[3].mxu0 }
  0xfe   : > { %v495_v24 = vadd.f32 %v494_v22, %v404_v21  ;;  %v1865_v25 = vpop.f32.mrb[3].mxu1 }
 0x11a   : > { %v605_v33 = vpop.f32.mrb[4].mxu0 }
 0x11b   : > { %v612_v34 = vadd.f32 %v605_v33, %v492_v19  ;;  %v1884_v35 = vpop.f32.mrb[5].mxu0  ;;  %v735_v36 = vpop.f32.mrb[4].mxu1  ;;  %v1481_v33 = vunpack.c.l.bf16 %v2346_v37 }
 0x11c   : > { %v608_v39 = vpop.f32.mrb[6].mxu0  ;;  %v1904_v40 = vpop.f32.mrb[5].mxu1 }
 0x11d   : > { %v613_v41 = vadd.f32 %v608_v39, %v495_v24  ;;  %v742_v42 = vadd.f32 %v735_v36, %v612_v34  ;;  %v1885_v43 = vpop.f32.mrb[7].mxu0  ;;  %v738_v44 = vpop.f32.mrb[6].mxu1  ;;  %v1723_v34 = vld [vmem:[%s2673_s4] ss:$0 sm:$0xff]  ;;  %v1488_v36 = vsel %vm1485_vm8, %v1486_v31, %v1487_v32  ;;  %v1489_v38 = vrot.slane %v1481_v33, 4 }
 0x11e   : > { %v1905_v45 = vpop.f32.mrb[7].mxu1 }
 0x11f   : > { %v743_v46 = vadd.f32 %v738_v44, %v613_v41  ;;  %v1490_v12 = vsel %vm1485_vm8, %v1487_v32, %v1489_v38 }
 0x13a   : > { %v851_v47 = vpop.f32.mrb[8].mxu0 }
 0x13b   : > { %v858_v48 = vadd.f32 %v851_v47, %v742_v42  ;;  %v1924_v49 = vpop.f32.mrb[9].mxu0  ;;  %v981_v1 = vpop.f32.mrb[8].mxu1 }
 0x13c   : > { %v854_v50 = vpop.f32.mrb[10].mxu0  ;;  %v1944_v51 = vpop.f32.mrb[9].mxu1 }
 0x13d   : > { %v859_v52 = vadd.f32 %v854_v50, %v743_v46  ;;  %v988_v53 = vadd.f32 %v981_v1, %v858_v48  ;;  %v1925_v54 = vpop.f32.mrb[11].mxu0  ;;  %v984_v55 = vpop.f32.mrb[10].mxu1 }
 0x13e   : > { %v1945_v56 = vpop.f32.mrb[11].mxu1 }
 0x13f   : > { %v989_v57 = vadd.f32 %v984_v55, %v859_v52 }
 0x15a   : > { %v1097_v58 = vpop.f32.mrb[12].mxu0 }
 0x15b   : > { %v1104_v59 = vadd.f32 %v1097_v58, %v988_v53  ;;  %v1964_v60 = vpop.f32.mrb[13].mxu0  ;;  %v1227_v61 = vpop.f32.mrb[12].mxu1 }
 0x15c   : > { %v1100_v62 = vpop.f32.mrb[14].mxu0  ;;  %v1984_v63 = vpop.f32.mrb[13].mxu1 }
 0x15d   : > { %v1105_v0 = vadd.f32 %v1100_v62, %v989_v57  ;;  %v1234_v2 = vadd.f32 %v1227_v61, %v1104_v59  ;;  %v1965_v3 = vpop.f32.mrb[15].mxu0  ;;  %v1230_v4 = vpop.f32.mrb[14].mxu1 }
 0x15e   : > { %v1985_v6 = vpop.f32.mrb[15].mxu1 }
 0x15f   : > { %v1235_v7 = vadd.f32 %v1230_v4, %v1105_v0 }
 0x17a   : > { %v1336_v9 = vpop.f32.mrb[16].mxu0 }
 0x17b   : > { %v1343_v10 = vadd.f32 %v1336_v9, %v1234_v2  ;;  %v2004_v11 = vpop.f32.mrb[17].mxu0 }
 0x17c   : > { %v1339_v13 = vpop.f32.mrb[18].mxu0 }
 0x17d   : > { %v1351_v14 = vadd.f32 %v1720_v8, %v1343_v10  ;;  %v1344_v15 = vadd.f32 %v1339_v13, %v1235_v7  ;;  %v2005_v16 = vpop.f32.mrb[19].mxu0 }
 0x17f   : > { %v1721_v17 = vmul.f32 -1.442695, %v1351_v14  ;;  %v1352_v18 = vadd.f32 %v1720_v8, %v1344_v15 }
 0x181   : > { %2141 = vpow2.f32 %v1721_v17  ;;  %v1722_v19 = vmul.f32 -1.442695, %v1352_v18 }
 0x183   : > { %2143 = vpow2.f32 %v1722_v19 }
 0x18b   : > { %v2142_v20 = vpop.eup %2141 }
 0x18c   : > { %v1359_v21 = vadd.f32 1.0, %v2142_v20 }
 0x18d   : > { %v2144_v22 = vpop.eup %2143 }
 0x18e   : > { %2145 = vrcp.f32 %v1359_v21  ;;  %v1360_v23 = vadd.f32 1.0, %v2144_v22 }
 0x190   : > { %2147 = vrcp.f32 %v1360_v23 }
 0x198   : > { %v2146_v24 = vpop.eup %2145 }
 0x199   : > { %v1365_v26 = vmul.f32 %v2146_v24, %v1351_v14 }
 0x19a   : > { %v2148_v25 = vpop.eup %2147 }
 0x19b   : > { %v1366_v27 = vmul.f32 %v2148_v25, %v1352_v18 }
 0x19d   : > { %v1367_v28 = vpack.c.bf16 %v1366_v27, %v1365_v26 }
 0x19f   : > { %2023 = vmatmul.mubr.bf16.vlgmr.msra.gmra.mrb[16].mxu1 %v1367_v28 }
 0x272   : > { %v1472_v35 = vpop.f32.mrb[16].mxu1 }
 0x273   : > { %v1473_v39 = vadd.f32 %v1723_v34, %v1472_v35  ;;  %v2024_v40 = vpop.f32.mrb[17].mxu1 }
 0x274   : > { %v1475_v41 = vpop.f32.mrb[18].mxu1 }
 0x275   : > { %v1476_v42 = vadd.f32 %v1723_v34, %v1475_v41  ;;  %v2025_v5 = vpop.f32.mrb[19].mxu1  ;;  %v1493_v43 = vadd.f32 %v1488_v36, %v1473_v39 }
 0x277   : > { %1495 = vxpose.xlu0.b32.start [1/2] (short) %v1493_v43, 128  ;;  %v1494_v44 = vadd.f32 %v1490_v12, %v1476_v42 }
 0x27b   : > { %1496 = vxpose.xlu0.b32.end [2/2] (short) %v1494_v44, 128 }
 0x2f7   : > { %v1511_v37 = vpop.trf.xlu0 }
 0x2f8   : > { %1528 = vst.msk [vmem:[%s2626_s29] sm:$0xff] %vm1527_vm9, %v1511_v37 }
 0x2fb   : > { %v1512_v45 = vpop.trf.xlu0 }
 0x2fc   : > { %1529 = vst.msk [vmem:[%s2626_s29 + $0x8] sm:$0xff] %vm1527_vm9, %v1512_v45 }
 0x2ff   : > { %v1513_v46 = vpop.trf.xlu0 }
 0x300   : > { %1530 = vst.msk [vmem:[%s2626_s29 + $0x10] sm:$0xff] %vm1527_vm9, %v1513_v46 }
 0x303   : > { %v1514_v47 = vpop.trf.xlu0 }
 0x304   : > { %1531 = vst.msk [vmem:[%s2626_s29 + $0x18] sm:$0xff] %vm1527_vm9, %v1514_v47 }
 0x307   : > { %v1515_v48 = vpop.trf.xlu0 }
 0x308   : > { %1532 = vst.msk [vmem:[%s2626_s29 + $0x20] sm:$0xff] %vm1527_vm9, %v1515_v48 }
 0x30b   : > { %v1516_v49 = vpop.trf.xlu0 }
 0x30c   : > { %1533 = vst.msk [vmem:[%s2626_s29 + $0x28] sm:$0xff] %vm1527_vm9, %v1516_v49 }
 0x30f   : > { %v1517_v1 = vpop.trf.xlu0 }
 0x310   : > { %1534 = vst.msk [vmem:[%s2626_s29 + $0x30] sm:$0xff] %vm1527_vm9, %v1517_v1 }
 0x313   : > { %v1518_v50 = vpop.trf.xlu0 }
 0x314   : > { %1535 = vst.msk [vmem:[%s2626_s29 + $0x38] sm:$0xff] %vm1527_vm9, %v1518_v50 }
 0x317   : > { %v1519_v51 = vpop.trf.xlu0 }
 0x318   : > { %1536 = vst.msk [vmem:[%s2626_s29 + $0x40] sm:$0xff] %vm1527_vm9, %v1519_v51 }
 0x31b   : > { %v1520_v52 = vpop.trf.xlu0 }
 0x31c   : > { %1537 = vst.msk [vmem:[%s2626_s29 + $0x48] sm:$0xff] %vm1527_vm9, %v1520_v52 }
 0x31f   : > { %v1521_v53 = vpop.trf.xlu0 }
 0x320   : > { %1538 = vst.msk [vmem:[%s2626_s29 + $0x50] sm:$0xff] %vm1527_vm9, %v1521_v53 }
 0x323   : > { %v1522_v54 = vpop.trf.xlu0 }
 0x324   : > { %1539 = vst.msk [vmem:[%s2626_s29 + $0x58] sm:$0xff] %vm1527_vm9, %v1522_v54 }
 0x327   : > { %v1523_v55 = vpop.trf.xlu0 }
 0x328   : > { %1540 = vst.msk [vmem:[%s2626_s29 + $0x60] sm:$0xff] %vm1527_vm9, %v1523_v55 }
 0x32b   : > { %v1524_v56 = vpop.trf.xlu0 }
 0x32c   : > { %1541 = vst.msk [vmem:[%s2626_s29 + $0x68] sm:$0xff] %vm1527_vm9, %v1524_v56 }
 0x32f   : > { %v1525_v57 = vpop.trf.xlu0 }
 0x330   : > { %1542 = vst.msk [vmem:[%s2626_s29 + $0x70] sm:$0xff] %vm1527_vm9, %v1525_v57 }
 0x333   : > { %v1526_v58 = vpop.trf.xlu0 }
 0x334   : > { %1543 = vst.msk [vmem:[%s2626_s29 + $0x78] sm:$0xff] %vm1527_vm9, %v1526_v58 }
 0x335 PF: > { %s15_s20 = sadd.s32 1, %s2171_s20   ;;  %s2675_s18 = smov %s2167_s19 }
 0x336   : > { %p12_p5 = scmp.ge.s32.totalorder %s15_s20, 4   ;;  %s2676_s19 = smov %s2678_s21 }
 0x338   :  { %14 = sbr.rel (!%p12_p5) target bundleno = 2 (0x2), region = 70 }

</bundles_post_ra>
